<compile_context>
chip_gen: v6e
topology: v6e:2x2x1
jax: 0.10.0
libtpu: 0.0.40
codegen_flags: <defaults>
</compile_context>

<pallas_src>
import functools
import jax
import jax.numpy as jnp
from jax.experimental import pallas as pl
from jax.experimental.pallas import tpu as pltpu

_VMEM_LIMIT = 32 * 1024 * 1024  # safe on v5e/v6e/v7x


# ----------------------------------------------------------------------------
# Tiling helper: blocks must have last-two dims divisible by (8, 128) OR equal
# to the full array dim.  We only ever pick full-dim blocks or aligned divisors,
# so no operand padding is ever required.
# ----------------------------------------------------------------------------

def _pick_tile(d, pref, align):
    if d <= pref:
        return d                      # full-dim block (always legal)
    t = (pref // align) * align
    while t >= align:
        if d % t == 0:
            return t
        t -= align
    return d                          # fallback: single full-dim block


# ----------------------------------------------------------------------------
# Fused matmul kernels:  out = [relu]( A @ B + bias [+ residual] )
#   A (M,K) bf16, B (K,N) bf16, bias (1,N) f32, residual (M,N) bf16 (optional).
#   f32 VMEM accumulator; reduction (k) is the innermost grid axis.
# ----------------------------------------------------------------------------

def _mm_bias_kernel(a_ref, b_ref, bias_ref, o_ref, acc_ref, *, relu):
    @pl.when(pl.program_id(2) == 0)
    def _():
        acc_ref[...] = jnp.zeros_like(acc_ref)

    acc_ref[...] += jnp.dot(a_ref[...], b_ref[...],
                            preferred_element_type=jnp.float32)

    @pl.when(pl.program_id(2) == pl.num_programs(2) - 1)
    def _():
        y = acc_ref[...] + bias_ref[...]
        if relu:
            y = jnp.maximum(y, 0.0)
        o_ref[...] = y.astype(o_ref.dtype)


def _mm_bias_res_relu_kernel(a_ref, b_ref, bias_ref, r_ref, o_ref, acc_ref):
    @pl.when(pl.program_id(2) == 0)
    def _():
        acc_ref[...] = jnp.zeros_like(acc_ref)

    acc_ref[...] += jnp.dot(a_ref[...], b_ref[...],
                            preferred_element_type=jnp.float32)

    @pl.when(pl.program_id(2) == pl.num_programs(2) - 1)
    def _():
        y = acc_ref[...] + bias_ref[...] + r_ref[...].astype(jnp.float32)
        o_ref[...] = jnp.maximum(y, 0.0).astype(o_ref.dtype)


def matmul_fused(a, b, bias, *, relu=False, residual=None,
                 out_dtype=jnp.bfloat16, tm_pref=256, tn_pref=256, tk_pref=1024):
    M, K = a.shape
    K2, N = b.shape
    assert K == K2 and bias.shape == (1, N)
    a = a.astype(jnp.bfloat16)
    b = b.astype(jnp.bfloat16)
    bias = bias.astype(jnp.float32)

    tm = _pick_tile(M, tm_pref, 8)
    tn = _pick_tile(N, tn_pref, 128)
    tk = _pick_tile(K, tk_pref, 128)
    grid = (M // tm, N // tn, K // tk)

    in_specs = [pl.BlockSpec((tm, tk), lambda i, j, k: (i, k)),
                pl.BlockSpec((tk, tn), lambda i, j, k: (k, j)),
                pl.BlockSpec((1, tn), lambda i, j, k: (0, j))]
    args = [a, b, bias]
    if residual is None:
        kernel = functools.partial(_mm_bias_kernel, relu=relu)
    else:
        assert residual.shape == (M, N)
        in_specs.append(pl.BlockSpec((tm, tn), lambda i, j, k: (i, j)))
        args.append(residual.astype(jnp.bfloat16))
        kernel = _mm_bias_res_relu_kernel

    return pl.pallas_call(
        kernel,
        out_shape=jax.ShapeDtypeStruct((M, N), out_dtype),
        grid_spec=pltpu.PrefetchScalarGridSpec(
            num_scalar_prefetch=0, grid=grid,
            in_specs=in_specs,
            out_specs=pl.BlockSpec((tm, tn), lambda i, j, k: (i, j)),
            scratch_shapes=[pltpu.VMEM((tm, tn), jnp.float32)]),
        compiler_params=pltpu.CompilerParams(
            dimension_semantics=("parallel", "parallel", "arbitrary"),
            vmem_limit_bytes=_VMEM_LIMIT),
    )(*args)


# ----------------------------------------------------------------------------
# Direct stride-1 3x3 conv kernel (no im2col).
# The padded NHWC image is flattened to (N, Lp, C); for tap (di, dj) the lhs of
# the tap matmul is simply the window starting at row di*Wp + dj.  Output is
# produced Wp-wide (OH*Wp rows); the (Wp - OW) junk columns per row are sliced
# off in the wrapper.  Epilogue fuses folded-BN bias + ReLU.
# ----------------------------------------------------------------------------

def _conv3x3_s1_kernel(x_ref, w_ref, b_ref, o_ref, *, oh, wp, relu):
    m = oh * wp
    acc = jnp.zeros((m, o_ref.shape[-1]), jnp.float32)
    for di in range(3):
        for dj in range(3):
            off = di * wp + dj
            lhs = x_ref[0, pl.ds(off, m), :]          # (m, C) bf16, static offset
            acc = acc + jnp.dot(lhs, w_ref[di * 3 + dj],
                                preferred_element_type=jnp.float32)
    y = acc + b_ref[...]
    if relu:
        y = jnp.maximum(y, 0.0)
    o_ref[0] = y.astype(o_ref.dtype)


def conv3x3_s1(x, w9, bias, *, relu=True, out_dtype=jnp.bfloat16):
    """x: (N,H,W,C) bf16;  w9: (9,C,OC) bf16;  bias: (1,OC) f32.  stride=1, pad=1."""
    N, H, W, C = x.shape
    OC = w9.shape[-1]
    OH, OW = H, W
    Wp = W + 2
    # pad H by (1, 2): the extra bottom row keeps every tap window in bounds.
    xp = jnp.pad(x, ((0, 0), (1, 2), (1, 1), (0, 0)))
    Lp = (H + 3) * Wp
    xf = xp.reshape(N, Lp, C)
    oct_ = OC if OC <= 256 else 256
    m = OH * Wp

    out = pl.pallas_call(
        functools.partial(_conv3x3_s1_kernel, oh=OH, wp=Wp, relu=relu),
        out_shape=jax.ShapeDtypeStruct((N, m, OC), out_dtype),
        grid=(N, OC // oct_),
        in_specs=[pl.BlockSpec((1, Lp, C), lambda n, j: (n, 0, 0)),
                  pl.BlockSpec((9, C, oct_), lambda n, j: (0, 0, j)),
                  pl.BlockSpec((1, oct_), lambda n, j: (0, j))],
        out_specs=pl.BlockSpec((1, m, oct_), lambda n, j: (n, 0, j)),
        compiler_params=pltpu.CompilerParams(
            dimension_semantics=("parallel", "parallel"),
            vmem_limit_bytes=_VMEM_LIMIT),
    )(xf, w9.astype(jnp.bfloat16), bias.astype(jnp.float32))

    return out.reshape(N, OH, Wp, OC)[:, :, :OW, :]


# ----------------------------------------------------------------------------
# im2col fallback (only the 7x7 stem and the three stride-2 3x3 convs).
# ----------------------------------------------------------------------------

def conv_im2col(x, w_col, bias, *, kh, kw, stride, padding, relu,
                out_dtype=jnp.bfloat16):
    """x NHWC; w_col: (C*kh*kw, OC) bf16 with (C-major, tap-minor) K ordering."""
    N, H, W, C = x.shape
    OC = w_col.shape[-1]
    xp = jnp.pad(x, ((0, 0), (padding, padding), (padding, padding), (0, 0)))
    oh = (H + 2 * padding - kh) // stride + 1
    ow = (W + 2 * padding - kw) // stride + 1
    cols = []
    for i in range(kh):
        for j in range(kw):
            cols.append(xp[:, i:i + stride * oh:stride, j:j + stride * ow:stride, :])
    patches = jnp.stack(cols, axis=-1).reshape(N * oh * ow, C * kh * kw)
    out = matmul_fused(patches, w_col, bias, relu=relu, out_dtype=out_dtype)
    return out.reshape(N, oh, ow, OC)


def maxpool_3x3_s2(x):
    # TODO(synk): MaxPool2d(3, stride=2, padding=1) kept in plain JAX (lax.reduce_window).
    return jax.lax.reduce_window(
        x, jnp.array(-jnp.inf, x.dtype), jax.lax.max,
        window_dimensions=(1, 3, 3, 1),
        window_strides=(1, 2, 2, 1),
        padding=((0, 0), (1, 1), (1, 1), (0, 0)))


# ----------------------------------------------------------------------------
# Deterministic raw parameters (ResNet-50 shapes, fc -> 275 classes)
# ----------------------------------------------------------------------------

class _ParamGen:
    def __init__(self, key):
        self._key = key

    def _next(self):
        self._key, sub = jax.random.split(self._key)
        return sub

    def conv(self, out_c, in_c, kh, kw):
        fan_in = in_c * kh * kw
        return (jax.random.normal(self._next(), (out_c, in_c, kh, kw), jnp.float32)
                * (2.0 / fan_in) ** 0.5)

    def bn(self, c):
        return {
            "weight": 1.0 + 0.1 * jax.random.normal(self._next(), (c,), jnp.float32),
            "bias": 0.1 * jax.random.normal(self._next(), (c,), jnp.float32),
            "mean": 0.1 * jax.random.normal(self._next(), (c,), jnp.float32),
            "var": jnp.abs(1.0 + 0.1 * jax.random.normal(self._next(), (c,), jnp.float32)),
        }

    def linear(self, out_f, in_f):
        bound = in_f ** -0.5
        w = jax.random.uniform(self._next(), (out_f, in_f), jnp.float32, -bound, bound)
        b = jax.random.uniform(self._next(), (out_f,), jnp.float32, -bound, bound)
        return w, b


def make_raw_params(key, num_classes=275):
    pg = _ParamGen(key)
    params = {"conv1": pg.conv(64, 3, 7, 7), "bn1": pg.bn(64)}
    layers = []
    in_c = 64
    for planes, n_blocks, stride in [(64, 3, 1), (128, 4, 2), (256, 6, 2), (512, 3, 2)]:
        layer = []
        for b in range(n_blocks):
            s = stride if b == 0 else 1
            blk = {
                "stride": s,
                "conv1": pg.conv(planes, in_c, 1, 1), "bn1": pg.bn(planes),
                "conv2": pg.conv(planes, planes, 3, 3), "bn2": pg.bn(planes),
                "conv3": pg.conv(planes * 4, planes, 1, 1), "bn3": pg.bn(planes * 4),
            }
            if s != 1 or in_c != planes * 4:
                blk["down_conv"] = pg.conv(planes * 4, in_c, 1, 1)
                blk["down_bn"] = pg.bn(planes * 4)
            layer.append(blk)
            in_c = planes * 4
        layers.append(layer)
    params["layers"] = layers
    params["fc_w"], params["fc_b"] = pg.linear(num_classes, in_c)
    return params


# ----------------------------------------------------------------------------
# Fold eval-mode BN into conv weights and pack everything for the kernels.
# ----------------------------------------------------------------------------

def _fold(w, bn, eps=1e-5):
    s = bn["weight"] * jax.lax.rsqrt(bn["var"] + eps)
    wf = w * s[:, None, None, None]
    bias = (bn["bias"] - bn["mean"] * s).reshape(1, -1).astype(jnp.float32)
    return wf, bias


def _as_1x1(wf):                    # (OC,C,1,1) -> (C,OC) bf16
    oc, c = wf.shape[:2]
    return wf.reshape(oc, c).T.astype(jnp.bfloat16)


def _as_3x3_taps(wf):               # (OC,C,3,3) -> (9,C,OC) bf16
    oc, c = wf.shape[:2]
    return jnp.transpose(wf, (2, 3, 1, 0)).reshape(9, c, oc).astype(jnp.bfloat16)


def _as_col(wf):                    # (OC,C,kh,kw) -> (C*kh*kw, OC) bf16
    oc = wf.shape[0]
    return wf.reshape(oc, -1).T.astype(jnp.bfloat16)


def prepare_inference_params(raw):
    p = {}
    w, b = _fold(raw["conv1"], raw["bn1"])
    p["stem_w"], p["stem_b"] = _as_col(w), b
    layers = []
    for layer in raw["layers"]:
        blks = []
        for rb in layer:
            blk = {"stride": rb["stride"]}
            w1, b1 = _fold(rb["conv1"], rb["bn1"]); blk["w1"], blk["b1"] = _as_1x1(w1), b1
            w2, b2 = _fold(rb["conv2"], rb["bn2"]); blk["b2"] = b2
            if rb["stride"] == 1:
                blk["w2"] = _as_3x3_taps(w2)
            else:
                blk["w2_col"] = _as_col(w2)
            w3, b3 = _fold(rb["conv3"], rb["bn3"]); blk["w3"], blk["b3"] = _as_1x1(w3), b3
            if "down_conv" in rb:
                wd, bd = _fold(rb["down_conv"], rb["down_bn"])
                blk["wd"], blk["bd"] = _as_1x1(wd), bd
            blks.append(blk)
        layers.append(blks)
    p["layers"] = layers
    p["fc_w"] = raw["fc_w"].T.astype(jnp.bfloat16)            # (2048, 275)
    p["fc_b"] = raw["fc_b"].reshape(1, -1).astype(jnp.float32)
    return p


# ----------------------------------------------------------------------------
# Forward pass (torchvision resnet50 with fc -> 275, eval mode)
# ----------------------------------------------------------------------------

def _bottleneck(x, blk):
    N, H, W, C = x.shape
    s = blk["stride"]

    # conv1 (1x1) + bn1 + relu   (fused matmul)
    out = matmul_fused(x.reshape(N * H * W, C), blk["w1"], blk["b1"], relu=True)
    out = out.reshape(N, H, W, -1)

    # conv2 (3x3, stride s) + bn2 + relu
    if s == 1:
        out = conv3x3_s1(out, blk["w2"], blk["b2"], relu=True)
    else:
        out = conv_im2col(out, blk["w2_col"], blk["b2"],
                          kh=3, kw=3, stride=s, padding=1, relu=True)
    N2, H2, W2, C2 = out.shape

    # identity branch (1x1 stride-s downsample conv + bn, fused; no relu)
    if "wd" in blk:
        xs = x[:, ::s, ::s, :] if s != 1 else x
        ident = matmul_fused(xs.reshape(N * H2 * W2, C), blk["wd"], blk["bd"],
                             relu=False)
    else:
        ident = x.reshape(N * H * W, C)

    # conv3 (1x1) + bn3 + residual add + relu, all fused in the matmul epilogue
    out = matmul_fused(out.reshape(N * H2 * W2, C2), blk["w3"], blk["b3"],
                       relu=True, residual=ident)
    return out.reshape(N, H2, W2, -1)


def birds_species_forward(params, img_nchw):
    """img_nchw: (N, 3, H, W) float32 (PyTorch layout). Returns (N, 275) f32 logits."""
    x = jnp.transpose(img_nchw, (0, 2, 3, 1)).astype(jnp.bfloat16)   # NCHW -> NHWC
    # stem: 7x7/2 conv + bn + relu (im2col + fused matmul), then maxpool.
    x = conv_im2col(x, params["stem_w"], params["stem_b"],
                    kh=7, kw=7, stride=2, padding=3, relu=True)
    x = maxpool_3x3_s2(x)
    for layer in params["layers"]:
        for blk in layer:
            x = _bottleneck(x, blk)
    # TODO(synk): AdaptiveAvgPool2d((1,1)) kept as a plain JAX mean reduction.
    feat = jnp.mean(x.astype(jnp.float32), axis=(1, 2))              # (N, 2048)
    logits = matmul_fused(feat.astype(jnp.bfloat16), params["fc_w"], params["fc_b"],
                          relu=False, out_dtype=jnp.float32)         # (N, 275)
    return logits


# ----------------------------------------------------------------------------
# Demo
# ----------------------------------------------------------------------------

if __name__ == "__main__":
    key = jax.random.PRNGKey(0)
    k_params, k_img = jax.random.split(key)

    raw = make_raw_params(k_params, num_classes=275)
    params = prepare_inference_params(raw)

    # Small input consistent with the module: 3-channel image, 32x32 spatial
    # (divisible by the net's total stride of 32), batch 2.
    img = jax.random.normal(k_img, (2, 3, 32, 32), jnp.float32)

    logits = birds_species_forward(params, img)
    logits = jax.block_until_ready(logits)

    assert logits.shape == (2, 275), logits.shape
    assert bool(jnp.all(jnp.isfinite(logits)))
    print("KERNEL_OK")
</pallas_src>

<mosaic_0001>
module attributes {stable_mosaic.version = 11 : i64} {
  func.func @_mm_bias_kernel(%arg0: i32, %arg1: i32, %arg2: i32, %arg3: memref<256x147xbf16, #tpu.memory_space<vmem>>, %arg4: memref<147x64xbf16, #tpu.memory_space<vmem>>, %arg5: memref<1x64xf32, #tpu.memory_space<vmem>>, %arg6: memref<256x64xbf16, #tpu.memory_space<vmem>>, %arg7: memref<256x64xf32, #tpu.memory_space<vmem>>) attributes {dimension_semantics = [#tpu.dimension_semantics<parallel>, #tpu.dimension_semantics<parallel>, #tpu.dimension_semantics<arbitrary>], iteration_bounds = array<i64: 2, 1, 1>, scalar_prefetch = 0 : i64, scratch_operands = 1 : i64, tpu.core_type = #tpu.core_type<tc>, window_params = [{transform_indices = @transform_0, window_bounds = array<i64: 256, 147>}, {transform_indices = @transform_1, window_bounds = array<i64: 147, 64>}, {transform_indices = @transform_2, window_bounds = array<i64: 1, 64>}, {transform_indices = @transform_3, window_bounds = array<i64: 256, 64>}]} {
    %c0_i32 = arith.constant 0 : i32
    %0 = arith.cmpi eq, %arg2, %c0_i32 : i32
    %1 = arith.extui %0 : i1 to i32
    %c0_i32_0 = arith.constant 0 : i32
    %2 = arith.cmpi ne, %1, %c0_i32_0 : i32
    scf.if %2 {
      %cst_10 = arith.constant 0.000000e+00 : f32
      %12 = vector.broadcast %cst_10 : f32 to vector<256x64xf32>
      %c0_11 = arith.constant 0 : index
      %c0_12 = arith.constant 0 : index
      %13 = vector.load %arg7[%c0_11, %c0_12] : memref<256x64xf32, #tpu.memory_space<vmem>>, vector<256x64xf32>
      tpu.vector_store %arg7[%c0_11, %c0_12], %12 {strides = array<i32>} : memref<256x64xf32, #tpu.memory_space<vmem>>, vector<256x64xf32>,
    } else {
    }
    %c0 = arith.constant 0 : index
    %c0_1 = arith.constant 0 : index
    %3 = vector.load %arg7[%c0, %c0_1] : memref<256x64xf32, #tpu.memory_space<vmem>>, vector<256x64xf32>
    %c0_2 = arith.constant 0 : index
    %c0_3 = arith.constant 0 : index
    %4 = vector.load %arg3[%c0_2, %c0_3] : memref<256x147xbf16, #tpu.memory_space<vmem>>, vector<256x147xbf16>
    %c0_4 = arith.constant 0 : index
    %c0_5 = arith.constant 0 : index
    %5 = vector.load %arg4[%c0_4, %c0_5] : memref<147x64xbf16, #tpu.memory_space<vmem>>, vector<147x64xbf16>
    %cst = arith.constant dense<0.000000e+00> : vector<256x64xf32>
    %6 = tpu.matmul %4, %5, %cst {dimension_numbers = #tpu.dot_dimension_numbers<[1], [0], [0], [1], [0, 0, 1, 1], [], []>} : vector<256x147xbf16>, vector<147x64xbf16>, vector<256x64xf32> -> vector<256x64xf32>
    %7 = arith.addf %3, %6 : vector<256x64xf32>
    %c0_6 = arith.constant 0 : index
    %c0_7 = arith.constant 0 : index
    %8 = vector.load %arg7[%c0_6, %c0_7] : memref<256x64xf32, #tpu.memory_space<vmem>>, vector<256x64xf32>
    tpu.vector_store %arg7[%c0_6, %c0_7], %7 {strides = array<i32>} : memref<256x64xf32, #tpu.memory_space<vmem>>, vector<256x64xf32>,
    %c0_i32_8 = arith.constant 0 : i32
    %9 = arith.cmpi eq, %arg2, %c0_i32_8 : i32
    %10 = arith.extui %9 : i1 to i32
    %c0_i32_9 = arith.constant 0 : i32
    %11 = arith.cmpi ne, %10, %c0_i32_9 : i32
    scf.if %11 {
      %c0_10 = arith.constant 0 : index
      %c0_11 = arith.constant 0 : index
      %12 = vector.load %arg7[%c0_10, %c0_11] : memref<256x64xf32, #tpu.memory_space<vmem>>, vector<256x64xf32>
      %c0_12 = arith.constant 0 : index
      %c0_13 = arith.constant 0 : index
      %13 = vector.load %arg5[%c0_12, %c0_13] : memref<1x64xf32, #tpu.memory_space<vmem>>, vector<1x64xf32>
      %14 = vector.broadcast %13 : vector<1x64xf32> to vector<256x64xf32>
      %15 = arith.addf %12, %14 : vector<256x64xf32>
      %cst_14 = arith.constant 0.000000e+00 : f32
      %16 = vector.broadcast %cst_14 : f32 to vector<256x64xf32>
      %17 = arith.maximumf %15, %16 : vector<256x64xf32>
      %18 = arith.truncf %17 : vector<256x64xf32> to vector<256x64xbf16>
      %c0_15 = arith.constant 0 : index
      %c0_16 = arith.constant 0 : index
      %19 = vector.load %arg6[%c0_15, %c0_16] : memref<256x64xbf16, #tpu.memory_space<vmem>>, vector<256x64xbf16>
      tpu.vector_store %arg6[%c0_15, %c0_16], %18 {strides = array<i32>} : memref<256x64xbf16, #tpu.memory_space<vmem>>, vector<256x64xbf16>,
    } else {
    }
    return
  }
  func.func @transform_0(%arg0: i32, %arg1: i32, %arg2: i32) -> (i32, i32) {
    %c0_i32 = arith.constant 0 : i32
    return %arg0, %arg2 : i32, i32
  }
  func.func @transform_1(%arg0: i32, %arg1: i32, %arg2: i32) -> (i32, i32) {
    %c0_i32 = arith.constant 0 : i32
    return %arg2, %arg1 : i32, i32
  }
  func.func @transform_2(%arg0: i32, %arg1: i32, %arg2: i32) -> (i32, i32) {
    %c0_i32 = arith.constant 0 : i32
    %c0_i32_0 = arith.constant 0 : i32
    return %c0_i32, %arg1 : i32, i32
  }
  func.func @transform_3(%arg0: i32, %arg1: i32, %arg2: i32) -> (i32, i32) {
    %c0_i32 = arith.constant 0 : i32
    return %arg0, %arg1 : i32, i32
  }
}

</mosaic_0001>

<bundles_post_ra>
// kernel: tpu_custom_call.1
= control target key start
LH: loop header
LB: loop body
LE: loop exit
PB: predicated region body
PF: predicated region fallthrough
CT: control target
= control target key end

     0   :  { %s1542_s12 = smov 0   ;;  %s1544_s13 = smov 0   ;;  %s1848_s0 = inlined_call_operand.vmem [shape: bf16[512,147], index: 0, kind: input, shape index: {}]   ;;  %s1849_s1 = inlined_call_operand.vmem [shape: bf16[147,64], index: 1, kind: input, shape index: {}]   ;;  %s1850_s2 = inlined_call_operand.vmem [shape: f32[1,64], index: 2, kind: input, shape index: {}]   ;;  %s1851_s3 = inlined_call_operand.vmem [shape: bf16[512,64], index: 3, kind: output, shape index: {}]  }
   0x1   :  { %s1546_s14 = smov 0  }
   0x2 LB: > { %s32_s15 = sadd.s32 1, %s1513_s13  ;;  %p1258_p0 = scmp.ge.s32.totalorder %s1517_s14, 1  ;;  %s1517_s14 = sphi %s1546_s14, %s13_s14   ;;  %s1513_s13 = sphi %s1544_s13, %s1853_s13   ;;  %s1509_s12 = sphi %s1542_s12, %s1852_s12  }
   0x3   : > { %p34_p1 = scmp.ge.s32.totalorder %s32_s15, 2  ;;  %p191_p2 = scmp.lt.s32.totalorder %s1517_s14, 3 }
   0x5   : > { %s1855_s15 = smov (%p34_p1, %s32_s15), 0  ;;  %p192_p3 = pnand %p1258_p0, %p191_p2 }
   0x6   : > { %s1259_s22 = sshll.u32 (!%p192_p3), %s1509_s12, 5 }
   0x7   : > { %195 = sbr.rel (%p192_p3) target bundleno = 324 (0x144), region = 32  ;;  %p236_p4 = scmp.lt.s32.totalorder (!%p192_p3), %s1259_s22, 63 }
   0xc   : > { %v1437_v0 = vld [vmem:[%s1849_s1 + $0x38] sm:$0xff]   ;;  %v1519_v1 = vmov 0   ;;  %v1438_v2 = vld [vmem:[%s1849_s1 + $0x30] sm:$0xff]   ;;  %v1439_v3 = vld [vmem:[%s1849_s1 + $0x28] sm:$0xff]   ;;  %s1857_s22 = smov (!%p236_p4, %s1259_s22), 63  ;;  %vm272_vm0 = vcmask 523264  }
   0xd   : > { %645 = vmatprep.subr.bf16.mxu0 %v1519_v1  ;;  %1390 = vmatprep.subr.bf16.mxu1 %v1519_v1  ;;  %v1440_v4 = vld [vmem:[%s1849_s1 + $0x20] sm:$0xff]   ;;  %s1357_s25 = sshll.u32 %s1857_s22, 3  ;;  %v1520_v5 = vmov 0.0   ;;  %v1441_v6 = vld [vmem:[%s1849_s1 + $0x18] sm:$0xff]   ;;  %vm589_vm1 = vcmask 154624   ;;  %v1442_v9 = vld [vmem:[%s1849_s1 + $0x10] sm:$0xff]  }
   0xe   : > { %646 = vmatpush1.bf16.msra.mxu0 %v1437_v0  ;;  %1400 = vmatpush1.bf16.msra.mxu1 %v1437_v0  ;;  %273 = vst.msk [vmem:[#allocation2] sm:$0xff] %vm272_vm0, %v1520_v5  ;;  %274 = vst.msk [vmem:[#allocation2 + $0x8] sm:$0xff] %vm272_vm0, %v1520_v5  ;;  %s1620_s28 = scalar_lea.vmem %s1848_s0, %s1357_s25  ;;  %vm638_vm2 = vcmask 1040384   ;;  %v1443_v10 = vld [vmem:[%s1849_s1 + $0x8] sm:$0xff]   ;;  %vm639_vm3 = vcmask 1041408   ;;  %v1521_v11 = vmov 65535  }
   0xf   : > { %647 = vmatprep.subr.bf16.mxu0 %v1519_v1  ;;  %1391 = vmatprep.subr.bf16.mxu1 %v1519_v1  ;;  %275 = vst.msk [vmem:[#allocation2 + $0x10] sm:$0xff] %vm272_vm0, %v1520_v5  ;;  %276 = vst.msk [vmem:[#allocation2 + $0x18] sm:$0xff] %vm272_vm0, %v1520_v5  ;;  %v1449_v7 = vld [vmem:[%s1620_s28 + $0x4] ss:$8 sps:$4 sm:$0xff]   ;;  %v640_v12 = vsel %vm638_vm2, 4294967295, %v1521_v11  ;;  %s1263_s19 = sshll.u32 %s1857_s22, 2 }
  0x10   : > { %277 = vst.msk [vmem:[#allocation2 + $0x20] sm:$0xff] %vm272_vm0, %v1520_v5  ;;  %278 = vst.msk [vmem:[#allocation2 + $0x28] sm:$0xff] %vm272_vm0, %v1520_v5  ;;  %v1452_v8 = vld [vmem:[%s1620_s28 + $0x84] ss:$8 sps:$4 sm:$0xff]   ;;  %1306 = vmatprep.mubr.msk.bf16.mxu0 %vm589_vm1, %v1449_v7  ;;  %v641_v15 = vsel %vm639_vm3, %v640_v12, 0  ;;  %s1717_s23 = scalar_lea.vmem %s1851_s3, %s1263_s19  ;;  %vm1105_vm4 = vcmask 519168  }
  0x11   : > { %279 = vst.msk [vmem:[#allocation2 + $0x30] sm:$0xff] %vm272_vm0, %v1520_v5  ;;  %280 = vst.msk [vmem:[#allocation2 + $0x38] sm:$0xff] %vm272_vm0, %v1520_v5  ;;  %1314 = vmatprep.mubr.msk.bf16.mxu1 %vm589_vm1, %v1452_v8  ;;  %v1444_v13 = vld [vmem:[%s1849_s1] sm:$0xff]   ;;  %v1445_v14 = vld [vmem:[%s1849_s1 + $0x48] ss:$0 sps:$4 sm:$0x33]  }
  0x12   : > { %648 = vmatpush1.bf16.msra.mxu0 %v1438_v2  ;;  %1401 = vmatpush1.bf16.msra.mxu1 %v1438_v2  ;;  %281 = vst.msk [vmem:[#allocation2 + $0x40] sm:$0xff] %vm272_vm0, %v1520_v5  ;;  %282 = vst.msk [vmem:[#allocation2 + $0x48] sm:$0xff] %vm272_vm0, %v1520_v5  ;;  %v643_v16 = vand.u32 %v1445_v14, %v641_v15  ;;  %v1446_v17 = vld [vmem:[%s1849_s1 + $0x40] sm:$0xff]   ;;  %v1453_v20 = vld [vmem:[%s1620_s28 + $0x14] ss:$8 sps:$4 sm:$0xff]  }
  0x13   : > { %649 = vmatprep.subr.bf16.mxu0 %v1519_v1  ;;  %1392 = vmatprep.subr.bf16.mxu1 %v1519_v1  ;;  %283 = vst.msk [vmem:[#allocation2 + $0x50] sm:$0xff] %vm272_vm0, %v1520_v5  ;;  %284 = vst.msk [vmem:[#allocation2 + $0x58] sm:$0xff] %vm272_vm0, %v1520_v5  ;;  %v1447_v18 = vld [vmem:[%s1620_s28] ss:$8 sps:$4 sm:$0xff]   ;;  %v1455_v21 = vld [vmem:[%s1620_s28 + $0x94] ss:$8 sps:$4 sm:$0xff]  }
  0x14   : > { %285 = vst.msk [vmem:[#allocation2 + $0x60] sm:$0xff] %vm272_vm0, %v1520_v5  ;;  %286 = vst.msk [vmem:[#allocation2 + $0x68] sm:$0xff] %vm272_vm0, %v1520_v5  ;;  %v1450_v19 = vld [vmem:[%s1620_s28 + $0x80] ss:$8 sps:$4 sm:$0xff]   ;;  %v1457_v22 = vld [vmem:[%s1620_s28 + $0x10] ss:$8 sps:$4 sm:$0xff]  }
  0x15   : > { %287 = vst.msk [vmem:[#allocation2 + $0x70] sm:$0xff] %vm272_vm0, %v1520_v5  ;;  %288 = vst.msk [vmem:[#allocation2 + $0x78] sm:$0xff] %vm272_vm0, %v1520_v5  ;;  %v1458_v23 = vld [vmem:[%s1620_s28 + $0x90] ss:$8 sps:$4 sm:$0xff]   ;;  %v1459_v24 = vld [vmem:[%s1620_s28 + $0x24] ss:$8 sps:$4 sm:$0xff]  }
  0x16   : > { %650 = vmatpush1.bf16.msra.mxu0 %v1439_v3  ;;  %1402 = vmatpush1.bf16.msra.mxu1 %v1439_v3  ;;  %289 = vst.msk [vmem:[#allocation2 + $0x80] sm:$0xff] %vm272_vm0, %v1520_v5  ;;  %290 = vst.msk [vmem:[#allocation2 + $0x88] sm:$0xff] %vm272_vm0, %v1520_v5  ;;  %v1461_v25 = vld [vmem:[%s1620_s28 + $0xa4] ss:$8 sps:$4 sm:$0xff]   ;;  %v1463_v26 = vld [vmem:[%s1620_s28 + $0x20] ss:$8 sps:$4 sm:$0xff]  }
  0x17   : > { %651 = vmatprep.subr.bf16.mxu0 %v1519_v1  ;;  %1393 = vmatprep.subr.bf16.mxu1 %v1519_v1  ;;  %291 = vst.msk [vmem:[#allocation2 + $0x90] sm:$0xff] %vm272_vm0, %v1520_v5  ;;  %292 = vst.msk [vmem:[#allocation2 + $0x98] sm:$0xff] %vm272_vm0, %v1520_v5  ;;  %v1464_v27 = vld [vmem:[%s1620_s28 + $0xa0] ss:$8 sps:$4 sm:$0xff]   ;;  %v1465_v28 = vld [vmem:[%s1620_s28 + $0x34] ss:$8 sps:$4 sm:$0xff]  }
  0x18   : > { %293 = vst.msk [vmem:[#allocation2 + $0xa0] sm:$0xff] %vm272_vm0, %v1520_v5  ;;  %294 = vst.msk [vmem:[#allocation2 + $0xa8] sm:$0xff] %vm272_vm0, %v1520_v5  ;;  %v1467_v29 = vld [vmem:[%s1620_s28 + $0xb4] ss:$8 sps:$4 sm:$0xff]   ;;  %v1469_v30 = vld [vmem:[%s1620_s28 + $0x30] ss:$8 sps:$4 sm:$0xff]  }
  0x19   : > { %295 = vst.msk [vmem:[#allocation2 + $0xb0] sm:$0xff] %vm272_vm0, %v1520_v5  ;;  %296 = vst.msk [vmem:[#allocation2 + $0xb8] sm:$0xff] %vm272_vm0, %v1520_v5  ;;  %v1470_v31 = vld [vmem:[%s1620_s28 + $0xb0] ss:$8 sps:$4 sm:$0xff]   ;;  %v1471_v32 = vld [vmem:[%s1620_s28 + $0x44] ss:$8 sps:$4 sm:$0xff]  }
  0x1a   : > { %297 = vst.msk [vmem:[#allocation2 + $0xc0] sm:$0xff] %vm272_vm0, %v1520_v5  ;;  %298 = vst.msk [vmem:[#allocation2 + $0xc8] sm:$0xff] %vm272_vm0, %v1520_v5  ;;  %652 = vmatpush1.bf16.msra.mxu0 %v1440_v4  ;;  %1403 = vmatpush1.bf16.msra.mxu1 %v1440_v4  ;;  %v1473_v33 = vld [vmem:[%s1620_s28 + $0xc4] ss:$8 sps:$4 sm:$0xff]   ;;  %v1475_v34 = vld [vmem:[%s1620_s28 + $0x40] ss:$8 sps:$4 sm:$0xff]  }
  0x1b   : > { %299 = vst.msk [vmem:[#allocation2 + $0xd0] sm:$0xff] %vm272_vm0, %v1520_v5  ;;  %300 = vst.msk [vmem:[#allocation2 + $0xd8] sm:$0xff] %vm272_vm0, %v1520_v5  ;;  %653 = vmatprep.subr.bf16.mxu0 %v1519_v1  ;;  %1394 = vmatprep.subr.bf16.mxu1 %v1519_v1  ;;  %v1476_v35 = vld [vmem:[%s1620_s28 + $0xc0] ss:$8 sps:$4 sm:$0xff]   ;;  %v1477_v36 = vld [vmem:[%s1620_s28 + $0x54] ss:$8 sps:$4 sm:$0xff]  }
  0x1c   : > { %301 = vst.msk [vmem:[#allocation2 + $0xe0] sm:$0xff] %vm272_vm0, %v1520_v5  ;;  %302 = vst.msk [vmem:[#allocation2 + $0xe8] sm:$0xff] %vm272_vm0, %v1520_v5  ;;  %v1479_v37 = vld [vmem:[%s1620_s28 + $0xd4] ss:$8 sps:$4 sm:$0xff]   ;;  %v1481_v38 = vld [vmem:[%s1620_s28 + $0x50] ss:$8 sps:$4 sm:$0xff]  }
  0x1d   : > { %303 = vst.msk [vmem:[#allocation2 + $0xf0] sm:$0xff] %vm272_vm0, %v1520_v5  ;;  %304 = vst.msk [vmem:[#allocation2 + $0xf8] sm:$0xff] %vm272_vm0, %v1520_v5  ;;  %v1482_v39 = vld [vmem:[%s1620_s28 + $0xd0] ss:$8 sps:$4 sm:$0xff]   ;;  %v1483_v40 = vld [vmem:[%s1620_s28 + $0x64] ss:$8 sps:$4 sm:$0xff]  }
  0x1e   : > { %654 = vmatpush1.bf16.msra.mxu0 %v1441_v6  ;;  %1404 = vmatpush1.bf16.msra.mxu1 %v1441_v6  ;;  %v1485_v41 = vld [vmem:[%s1620_s28 + $0xe4] ss:$8 sps:$4 sm:$0xff]   ;;  %v1487_v42 = vld [vmem:[%s1620_s28 + $0x60] ss:$8 sps:$4 sm:$0xff]   ;;  %v1489_v44 = vld [vmem:[%s1620_s28 + $0x74] ss:$8 sps:$4 sm:$0xff]  }
  0x1f   : > { %655 = vmatprep.subr.bf16.mxu0 %v1519_v1  ;;  %1395 = vmatprep.subr.bf16.mxu1 %v1519_v1  ;;  %v1488_v43 = vld [vmem:[%s1620_s28 + $0xe0] ss:$8 sps:$4 sm:$0xff]   ;;  %v1491_v45 = vld [vmem:[%s1620_s28 + $0xf4] ss:$8 sps:$4 sm:$0xff]   ;;  %v1493_v46 = vld [vmem:[%s1620_s28 + $0x70] ss:$8 sps:$4 sm:$0xff]  }
  0x20   : > { %v1494_v47 = vld [vmem:[%s1620_s28 + $0xf0] ss:$8 sps:$4 sm:$0xff]   ;;  %v305_v48 = vld [vmem:[#allocation2] sm:$0xff]  ;;  %v306_v56 = vld [vmem:[#allocation2 + $0x8] sm:$0xff] }
  0x21   : > { %v321_v49 = vld [vmem:[#allocation2 + $0x80] sm:$0xff]  ;;  %v322_v57 = vld [vmem:[#allocation2 + $0x88] sm:$0xff]  ;;  %v307_v0 = vld [vmem:[#allocation2 + $0x10] sm:$0xff] }
  0x22   : > { %656 = vmatpush1.bf16.msra.mxu0 %v1442_v9  ;;  %1405 = vmatpush1.bf16.msra.mxu1 %v1442_v9  ;;  %v1707_v2 = vld [vmem:[%s1850_s2] ss:$0 sm:$0xff]  ;;  %v308_v7 = vld [vmem:[#allocation2 + $0x18] sm:$0xff] }
  0x23   : > { %657 = vmatprep.subr.bf16.mxu0 %v1519_v1  ;;  %1396 = vmatprep.subr.bf16.mxu1 %v1519_v1  ;;  %v324_v12 = vld [vmem:[#allocation2 + $0x98] sm:$0xff] }
  0x26   : > { %658 = vmatpush1.bf16.msra.mxu0 %v1443_v10  ;;  %1406 = vmatpush1.bf16.msra.mxu1 %v1443_v10 }
  0x27   : > { %659 = vmatprep.subr.bf16.mxu0 %v1519_v1  ;;  %1397 = vmatprep.subr.bf16.mxu1 %v1519_v1 }
  0x2a   : > { %660 = vmatpush1.bf16.msra.mxu0 %v1444_v13  ;;  %1407 = vmatpush1.bf16.msra.mxu1 %v1444_v13 }
  0x2b   : > { %673 = vmatprep.subr.bf16.mxu0 %v1519_v1  ;;  %1398 = vmatprep.subr.bf16.mxu1 %v1519_v1 }
  0x2e   : > { %674 = vmatpush2.bf16.msra.mxu0 %v643_v16  ;;  %1408 = vmatpush2.bf16.msra.mxu1 %v643_v16 }
  0x2f   : > { %675 = vmatprep.subr.bf16.mxu0 %v1519_v1  ;;  %1399 = vmatprep.subr.bf16.mxu1 %v1519_v1  ;;  %v323_v1 = vld [vmem:[#allocation2 + $0x90] sm:$0xff] }
  0x32   : > { %676 = vmatpush2.bf16.msra.mxu0 %v1446_v17  ;;  %1409 = vmatpush2.bf16.msra.mxu1 %v1446_v17 }
  0x35   : > { %678 = vmatmul.mubr.bf16.vlgmr.msra.gmra.mxu0 %v1447_v18  ;;  %742 = vmatmul.mubr.bf16.vlgmr.msra.gmra.mxu1 %v1450_v19 }
  0x36   : > { %1307 = vmatprep.mubr.msk.bf16.mxu0 %vm589_vm1, %v1453_v20  ;;  %1315 = vmatprep.mubr.msk.bf16.mxu1 %vm589_vm1, %v1455_v21  ;;  %v309_v21 = vld [vmem:[#allocation2 + $0x20] sm:$0xff] }
  0x3d   : > { %686 = vmatmul.mubr.bf16.gmra.mxu0 %v1457_v22  ;;  %750 = vmatmul.mubr.bf16.gmra.mxu1 %v1458_v23 }
  0x3e   : > { %1308 = vmatprep.mubr.msk.bf16.mxu0 %vm589_vm1, %v1459_v24  ;;  %1316 = vmatprep.mubr.msk.bf16.mxu1 %vm589_vm1, %v1461_v25 }
  0x45   : > { %694 = vmatmul.mubr.bf16.gmra.mxu0 %v1463_v26  ;;  %758 = vmatmul.mubr.bf16.gmra.mxu1 %v1464_v27  ;;  %v325_v26 = vld [vmem:[#allocation2 + $0xa0] sm:$0xff] }
  0x46   : > { %1309 = vmatprep.mubr.msk.bf16.mxu0 %vm589_vm1, %v1465_v28  ;;  %1317 = vmatprep.mubr.msk.bf16.mxu1 %vm589_vm1, %v1467_v29 }
  0x4d   : > { %702 = vmatmul.mubr.bf16.gmra.mxu0 %v1469_v30  ;;  %766 = vmatmul.mubr.bf16.gmra.mxu1 %v1470_v31 }
  0x4e   : > { %1310 = vmatprep.mubr.msk.bf16.mxu0 %vm589_vm1, %v1471_v32  ;;  %1318 = vmatprep.mubr.msk.bf16.mxu1 %vm589_vm1, %v1473_v33 }
  0x55   : > { %710 = vmatmul.mubr.bf16.gmra.mxu0 %v1475_v34  ;;  %774 = vmatmul.mubr.bf16.gmra.mxu1 %v1476_v35 }
  0x56   : > { %1311 = vmatprep.mubr.msk.bf16.mxu0 %vm589_vm1, %v1477_v36  ;;  %1319 = vmatprep.mubr.msk.bf16.mxu1 %vm589_vm1, %v1479_v37  ;;  %v310_v37 = vld [vmem:[#allocation2 + $0x28] sm:$0xff] }
  0x5d   : > { %718 = vmatmul.mubr.bf16.gmra.mxu0 %v1481_v38  ;;  %782 = vmatmul.mubr.bf16.gmra.mxu1 %v1482_v39 }
  0x5e   : > { %1312 = vmatprep.mubr.msk.bf16.mxu0 %vm589_vm1, %v1483_v40  ;;  %1320 = vmatprep.mubr.msk.bf16.mxu1 %vm589_vm1, %v1485_v41 }
  0x65   : > { %726 = vmatmul.mubr.bf16.gmra.mxu0 %v1487_v42  ;;  %790 = vmatmul.mubr.bf16.gmra.mxu1 %v1488_v43  ;;  %v326_v42 = vld [vmem:[#allocation2 + $0xa8] sm:$0xff] }
  0x66   : > { %1313 = vmatprep.mubr.msk.bf16.mxu0 %vm589_vm1, %v1489_v44  ;;  %1321 = vmatprep.mubr.msk.bf16.mxu1 %vm589_vm1, %v1491_v45 }
  0x6d   : > { %734 = vmatmul.mubr.bf16.gmra.mxu0 %v1493_v46  ;;  %798 = vmatmul.mubr.bf16.gmra.mxu1 %v1494_v47 }
  0xf5   : > { %v679_v50 = vpop.f32.mrf.mxu0  ;;  %v743_v51 = vpop.f32.mrf.mxu1 }
  0xf6   : > { %v806_v52 = vadd.f32 %v679_v50, %v305_v48  ;;  %v822_v53 = vadd.f32 %v743_v51, %v321_v49 }
  0xf7   : > { %v681_v54 = vpop.f32.mrf.mxu0  ;;  %v745_v55 = vpop.f32.mrf.mxu1 }
  0xf8   : > { %839 = vst.msk [vmem:[#allocation2] sm:$0xff] %vm272_vm0, %v806_v52  ;;  %855 = vst.msk [vmem:[#allocation2 + $0x80] sm:$0xff] %vm272_vm0, %v822_v53  ;;  %v311_v53 = vld [vmem:[#allocation2 + $0x30] sm:$0xff] }
  0xf9   : > { %v682_v58 = vpop.f32.mrf.mxu0  ;;  %v746_v59 = vpop.f32.mrf.mxu1 }
  0xfa   : > { %v807_v60 = vadd.f32 %v682_v58, %v306_v56  ;;  %v823_v61 = vadd.f32 %v746_v59, %v322_v57  ;;  %v327_v58 = vld [vmem:[#allocation2 + $0xb0] sm:$0xff] }
  0xfb   : > { %v684_v62 = vpop.f32.mrf.mxu0  ;;  %v748_v63 = vpop.f32.mrf.mxu1 }
  0xfc   : > { %840 = vst.msk [vmem:[#allocation2 + $0x8] sm:$0xff] %vm272_vm0, %v807_v60  ;;  %856 = vst.msk [vmem:[#allocation2 + $0x88] sm:$0xff] %vm272_vm0, %v823_v61 }
  0xfd   : > { %v687_v3 = vpop.f32.mrf.mxu0  ;;  %v751_v4 = vpop.f32.mrf.mxu1 }
  0xfe   : > { %v808_v5 = vadd.f32 %v687_v3, %v307_v0  ;;  %v824_v6 = vadd.f32 %v751_v4, %v323_v1 }
  0xff   : > { %v874_v8 = vld [vmem:[#allocation2] sm:$0xff]  ;;  %v689_v10 = vpop.f32.mrf.mxu0  ;;  %v753_v11 = vpop.f32.mrf.mxu1 }
 0x100   : > { %v890_v9 = vld [vmem:[#allocation2 + $0x80] sm:$0xff]  ;;  %v913_v13 = vadd.f32 %v1707_v2, %v874_v8  ;;  %841 = vst.msk [vmem:[#allocation2 + $0x10] sm:$0xff] %vm272_vm0, %v808_v5  ;;  %857 = vst.msk [vmem:[#allocation2 + $0x90] sm:$0xff] %vm272_vm0, %v824_v6  ;;  %v312_v6 = vld [vmem:[#allocation2 + $0x38] sm:$0xff] }
 0x101   : > { %v929_v14 = vadd.f32 %v1707_v2, %v890_v9  ;;  %v690_v15 = vpop.f32.mrf.mxu0  ;;  %v754_v16 = vpop.f32.mrf.mxu1  ;;  %v328_v11 = vld [vmem:[#allocation2 + $0xb8] sm:$0xff] }
 0x102   : > { %v945_v17 = vmax.f32 %v913_v13, 0.0  ;;  %v809_v19 = vadd.f32 %v690_v15, %v308_v7  ;;  %v825_v20 = vadd.f32 %v754_v16, %v324_v12 }
 0x103   : > { %v961_v18 = vmax.f32 %v929_v14, 0.0  ;;  %v875_v22 = vld [vmem:[#allocation2 + $0x8] sm:$0xff]  ;;  %v692_v24 = vpop.f32.mrf.mxu0  ;;  %v756_v25 = vpop.f32.mrf.mxu1 }
 0x104   : > { %v891_v23 = vld [vmem:[#allocation2 + $0x88] sm:$0xff]  ;;  %v1358_v27 = vpack.c.bf16 %v945_v17, %v945_v17  ;;  %v914_v29 = vadd.f32 %v1707_v2, %v875_v22  ;;  %842 = vst.msk [vmem:[#allocation2 + $0x18] sm:$0xff] %vm272_vm0, %v809_v19  ;;  %858 = vst.msk [vmem:[#allocation2 + $0x98] sm:$0xff] %vm272_vm0, %v825_v20  ;;  %v313_v22 = vld [vmem:[#allocation2 + $0x40] sm:$0xff] }
 0x105   : > { %v1374_v28 = vpack.c.bf16 %v961_v18, %v961_v18  ;;  %v930_v30 = vadd.f32 %v1707_v2, %v891_v23  ;;  %v695_v31 = vpop.f32.mrf.mxu0  ;;  %v759_v32 = vpop.f32.mrf.mxu1 }
 0x106   : > { %1106 = vst.msk [vmem:[%s1717_s23] sm:$0xf] %vm1105_vm4, %v1358_v27  ;;  %v946_v33 = vmax.f32 %v914_v29, 0.0  ;;  %v810_v35 = vadd.f32 %v695_v31, %v309_v21  ;;  %v826_v36 = vadd.f32 %v759_v32, %v325_v26  ;;  %v329_v27 = vld [vmem:[#allocation2 + $0xc0] sm:$0xff] }
 0x107   : > { %1122 = vst.msk [vmem:[%s1717_s23 + $0x40] sm:$0xf] %vm1105_vm4, %v1374_v28  ;;  %v962_v34 = vmax.f32 %v930_v30, 0.0  ;;  %v876_v38 = vld [vmem:[#allocation2 + $0x10] sm:$0xff]  ;;  %v697_v40 = vpop.f32.mrf.mxu0  ;;  %v761_v41 = vpop.f32.mrf.mxu1 }
 0x108   : > { %v892_v39 = vld [vmem:[#allocation2 + $0x90] sm:$0xff]  ;;  %v1359_v43 = vpack.c.bf16 %v946_v33, %v946_v33  ;;  %v915_v45 = vadd.f32 %v1707_v2, %v876_v38  ;;  %843 = vst.msk [vmem:[#allocation2 + $0x20] sm:$0xff] %vm272_vm0, %v810_v35  ;;  %859 = vst.msk [vmem:[#allocation2 + $0xa0] sm:$0xff] %vm272_vm0, %v826_v36  ;;  %v314_v38 = vld [vmem:[#allocation2 + $0x48] sm:$0xff] }
 0x109   : > { %v1375_v44 = vpack.c.bf16 %v962_v34, %v962_v34  ;;  %v931_v46 = vadd.f32 %v1707_v2, %v892_v39  ;;  %v698_v47 = vpop.f32.mrf.mxu0  ;;  %v762_v48 = vpop.f32.mrf.mxu1 }
 0x10a   : > { %1107 = vst.msk [vmem:[%s1717_s23 + $0x4] sm:$0xf] %vm1105_vm4, %v1359_v43  ;;  %v947_v49 = vmax.f32 %v915_v45, 0.0  ;;  %v811_v51 = vadd.f32 %v698_v47, %v310_v37  ;;  %v827_v52 = vadd.f32 %v762_v48, %v326_v42  ;;  %v330_v43 = vld [vmem:[#allocation2 + $0xc8] sm:$0xff] }
 0x10b   : > { %1123 = vst.msk [vmem:[%s1717_s23 + $0x44] sm:$0xf] %vm1105_vm4, %v1375_v44  ;;  %v963_v50 = vmax.f32 %v931_v46, 0.0  ;;  %v877_v54 = vld [vmem:[#allocation2 + $0x18] sm:$0xff]  ;;  %v700_v56 = vpop.f32.mrf.mxu0  ;;  %v764_v57 = vpop.f32.mrf.mxu1 }
 0x10c   : > { %v893_v55 = vld [vmem:[#allocation2 + $0x98] sm:$0xff]  ;;  %v1360_v59 = vpack.c.bf16 %v947_v49, %v947_v49  ;;  %v916_v61 = vadd.f32 %v1707_v2, %v877_v54  ;;  %844 = vst.msk [vmem:[#allocation2 + $0x28] sm:$0xff] %vm272_vm0, %v811_v51  ;;  %860 = vst.msk [vmem:[#allocation2 + $0xa8] sm:$0xff] %vm272_vm0, %v827_v52  ;;  %v315_v54 = vld [vmem:[#allocation2 + $0x50] sm:$0xff] }
 0x10d   : > { %v1376_v60 = vpack.c.bf16 %v963_v50, %v963_v50  ;;  %v932_v62 = vadd.f32 %v1707_v2, %v893_v55  ;;  %v703_v63 = vpop.f32.mrf.mxu0  ;;  %v767_v0 = vpop.f32.mrf.mxu1 }
 0x10e   : > { %1108 = vst.msk [vmem:[%s1717_s23 + $0x8] sm:$0xf] %vm1105_vm4, %v1360_v59  ;;  %v948_v1 = vmax.f32 %v916_v61, 0.0  ;;  %v812_v4 = vadd.f32 %v703_v63, %v311_v53  ;;  %v828_v5 = vadd.f32 %v767_v0, %v327_v58  ;;  %v331_v59 = vld [vmem:[#allocation2 + $0xd0] sm:$0xff] }
 0x10f   : > { %1124 = vst.msk [vmem:[%s1717_s23 + $0x48] sm:$0xf] %vm1105_vm4, %v1376_v60  ;;  %v964_v3 = vmax.f32 %v932_v62, 0.0  ;;  %v878_v7 = vld [vmem:[#allocation2 + $0x20] sm:$0xff]  ;;  %v705_v9 = vpop.f32.mrf.mxu0  ;;  %v769_v10 = vpop.f32.mrf.mxu1 }
 0x110   : > { %v894_v8 = vld [vmem:[#allocation2 + $0xa0] sm:$0xff]  ;;  %v1361_v12 = vpack.c.bf16 %v948_v1, %v948_v1  ;;  %v917_v14 = vadd.f32 %v1707_v2, %v878_v7  ;;  %845 = vst.msk [vmem:[#allocation2 + $0x30] sm:$0xff] %vm272_vm0, %v812_v4  ;;  %861 = vst.msk [vmem:[#allocation2 + $0xb0] sm:$0xff] %vm272_vm0, %v828_v5  ;;  %v316_v7 = vld [vmem:[#allocation2 + $0x58] sm:$0xff] }
 0x111   : > { %v1377_v13 = vpack.c.bf16 %v964_v3, %v964_v3  ;;  %v933_v15 = vadd.f32 %v1707_v2, %v894_v8  ;;  %v706_v16 = vpop.f32.mrf.mxu0  ;;  %v770_v17 = vpop.f32.mrf.mxu1 }
 0x112   : > { %1109 = vst.msk [vmem:[%s1717_s23 + $0xc] sm:$0xf] %vm1105_vm4, %v1361_v12  ;;  %v949_v18 = vmax.f32 %v917_v14, 0.0  ;;  %v813_v20 = vadd.f32 %v706_v16, %v312_v6  ;;  %v829_v21 = vadd.f32 %v770_v17, %v328_v11  ;;  %v332_v12 = vld [vmem:[#allocation2 + $0xd8] sm:$0xff] }
 0x113   : > { %1125 = vst.msk [vmem:[%s1717_s23 + $0x4c] sm:$0xf] %vm1105_vm4, %v1377_v13  ;;  %v965_v19 = vmax.f32 %v933_v15, 0.0  ;;  %v879_v23 = vld [vmem:[#allocation2 + $0x28] sm:$0xff]  ;;  %v708_v25 = vpop.f32.mrf.mxu0  ;;  %v772_v26 = vpop.f32.mrf.mxu1 }
 0x114   : > { %v895_v24 = vld [vmem:[#allocation2 + $0xa8] sm:$0xff]  ;;  %v1362_v28 = vpack.c.bf16 %v949_v18, %v949_v18  ;;  %v918_v30 = vadd.f32 %v1707_v2, %v879_v23  ;;  %846 = vst.msk [vmem:[#allocation2 + $0x38] sm:$0xff] %vm272_vm0, %v813_v20  ;;  %862 = vst.msk [vmem:[#allocation2 + $0xb8] sm:$0xff] %vm272_vm0, %v829_v21  ;;  %v317_v23 = vld [vmem:[#allocation2 + $0x60] sm:$0xff] }
 0x115   : > { %v1378_v29 = vpack.c.bf16 %v965_v19, %v965_v19  ;;  %v934_v31 = vadd.f32 %v1707_v2, %v895_v24  ;;  %v711_v32 = vpop.f32.mrf.mxu0  ;;  %v775_v33 = vpop.f32.mrf.mxu1 }
 0x116   : > { %1110 = vst.msk [vmem:[%s1717_s23 + $0x10] sm:$0xf] %vm1105_vm4, %v1362_v28  ;;  %v950_v34 = vmax.f32 %v918_v30, 0.0  ;;  %v814_v36 = vadd.f32 %v711_v32, %v313_v22  ;;  %v830_v37 = vadd.f32 %v775_v33, %v329_v27  ;;  %v333_v28 = vld [vmem:[#allocation2 + $0xe0] sm:$0xff] }
 0x117   : > { %1126 = vst.msk [vmem:[%s1717_s23 + $0x50] sm:$0xf] %vm1105_vm4, %v1378_v29  ;;  %v966_v35 = vmax.f32 %v934_v31, 0.0  ;;  %v880_v39 = vld [vmem:[#allocation2 + $0x30] sm:$0xff]  ;;  %v713_v41 = vpop.f32.mrf.mxu0  ;;  %v777_v42 = vpop.f32.mrf.mxu1 }
 0x118   : > { %v896_v40 = vld [vmem:[#allocation2 + $0xb0] sm:$0xff]  ;;  %v1363_v44 = vpack.c.bf16 %v950_v34, %v950_v34  ;;  %v919_v46 = vadd.f32 %v1707_v2, %v880_v39  ;;  %847 = vst.msk [vmem:[#allocation2 + $0x40] sm:$0xff] %vm272_vm0, %v814_v36  ;;  %863 = vst.msk [vmem:[#allocation2 + $0xc0] sm:$0xff] %vm272_vm0, %v830_v37  ;;  %v318_v39 = vld [vmem:[#allocation2 + $0x68] sm:$0xff] }
 0x119   : > { %v1379_v45 = vpack.c.bf16 %v966_v35, %v966_v35  ;;  %v935_v47 = vadd.f32 %v1707_v2, %v896_v40  ;;  %v714_v48 = vpop.f32.mrf.mxu0  ;;  %v778_v49 = vpop.f32.mrf.mxu1 }
 0x11a   : > { %1111 = vst.msk [vmem:[%s1717_s23 + $0x14] sm:$0xf] %vm1105_vm4, %v1363_v44  ;;  %v951_v50 = vmax.f32 %v919_v46, 0.0  ;;  %v815_v52 = vadd.f32 %v714_v48, %v314_v38  ;;  %v831_v53 = vadd.f32 %v778_v49, %v330_v43  ;;  %v334_v44 = vld [vmem:[#allocation2 + $0xe8] sm:$0xff] }
 0x11b   : > { %1127 = vst.msk [vmem:[%s1717_s23 + $0x54] sm:$0xf] %vm1105_vm4, %v1379_v45  ;;  %v967_v51 = vmax.f32 %v935_v47, 0.0  ;;  %v881_v55 = vld [vmem:[#allocation2 + $0x38] sm:$0xff]  ;;  %v716_v57 = vpop.f32.mrf.mxu0  ;;  %v780_v58 = vpop.f32.mrf.mxu1 }
 0x11c   : > { %v897_v56 = vld [vmem:[#allocation2 + $0xb8] sm:$0xff]  ;;  %v1364_v60 = vpack.c.bf16 %v951_v50, %v951_v50  ;;  %v920_v62 = vadd.f32 %v1707_v2, %v881_v55  ;;  %848 = vst.msk [vmem:[#allocation2 + $0x48] sm:$0xff] %vm272_vm0, %v815_v52  ;;  %864 = vst.msk [vmem:[#allocation2 + $0xc8] sm:$0xff] %vm272_vm0, %v831_v53  ;;  %v319_v55 = vld [vmem:[#allocation2 + $0x70] sm:$0xff] }
 0x11d   : > { %v1380_v61 = vpack.c.bf16 %v967_v51, %v967_v51  ;;  %v936_v63 = vadd.f32 %v1707_v2, %v897_v56  ;;  %v719_v0 = vpop.f32.mrf.mxu0  ;;  %v783_v1 = vpop.f32.mrf.mxu1 }
 0x11e   : > { %1112 = vst.msk [vmem:[%s1717_s23 + $0x18] sm:$0xf] %vm1105_vm4, %v1364_v60  ;;  %v952_v3 = vmax.f32 %v920_v62, 0.0  ;;  %v816_v5 = vadd.f32 %v719_v0, %v315_v54  ;;  %v832_v6 = vadd.f32 %v783_v1, %v331_v59  ;;  %v335_v60 = vld [vmem:[#allocation2 + $0xf0] sm:$0xff] }
 0x11f   : > { %1128 = vst.msk [vmem:[%s1717_s23 + $0x58] sm:$0xf] %vm1105_vm4, %v1380_v61  ;;  %v968_v4 = vmax.f32 %v936_v63, 0.0  ;;  %v882_v8 = vld [vmem:[#allocation2 + $0x40] sm:$0xff]  ;;  %v721_v10 = vpop.f32.mrf.mxu0  ;;  %v785_v11 = vpop.f32.mrf.mxu1 }
 0x120   : > { %v898_v9 = vld [vmem:[#allocation2 + $0xc0] sm:$0xff]  ;;  %v1365_v13 = vpack.c.bf16 %v952_v3, %v952_v3  ;;  %v921_v15 = vadd.f32 %v1707_v2, %v882_v8  ;;  %849 = vst.msk [vmem:[#allocation2 + $0x50] sm:$0xff] %vm272_vm0, %v816_v5  ;;  %865 = vst.msk [vmem:[#allocation2 + $0xd0] sm:$0xff] %vm272_vm0, %v832_v6  ;;  %v320_v8 = vld [vmem:[#allocation2 + $0x78] sm:$0xff] }
 0x121   : > { %v1381_v14 = vpack.c.bf16 %v968_v4, %v968_v4  ;;  %v937_v16 = vadd.f32 %v1707_v2, %v898_v9  ;;  %v722_v17 = vpop.f32.mrf.mxu0  ;;  %v786_v18 = vpop.f32.mrf.mxu1 }
 0x122   : > { %1113 = vst.msk [vmem:[%s1717_s23 + $0x1c] sm:$0xf] %vm1105_vm4, %v1365_v13  ;;  %v953_v19 = vmax.f32 %v921_v15, 0.0  ;;  %v817_v21 = vadd.f32 %v722_v17, %v316_v7  ;;  %v833_v22 = vadd.f32 %v786_v18, %v332_v12  ;;  %v336_v13 = vld [vmem:[#allocation2 + $0xf8] sm:$0xff] }
 0x123   : > { %1129 = vst.msk [vmem:[%s1717_s23 + $0x5c] sm:$0xf] %vm1105_vm4, %v1381_v14  ;;  %v969_v20 = vmax.f32 %v937_v16, 0.0  ;;  %v883_v24 = vld [vmem:[#allocation2 + $0x48] sm:$0xff]  ;;  %v724_v26 = vpop.f32.mrf.mxu0  ;;  %v788_v27 = vpop.f32.mrf.mxu1 }
 0x124   : > { %v899_v25 = vld [vmem:[#allocation2 + $0xc8] sm:$0xff]  ;;  %v1366_v29 = vpack.c.bf16 %v953_v19, %v953_v19  ;;  %v922_v31 = vadd.f32 %v1707_v2, %v883_v24  ;;  %850 = vst.msk [vmem:[#allocation2 + $0x58] sm:$0xff] %vm272_vm0, %v817_v21  ;;  %866 = vst.msk [vmem:[#allocation2 + $0xd8] sm:$0xff] %vm272_vm0, %v833_v22 }
 0x125   : > { %v1382_v30 = vpack.c.bf16 %v969_v20, %v969_v20  ;;  %v938_v32 = vadd.f32 %v1707_v2, %v899_v25  ;;  %v727_v33 = vpop.f32.mrf.mxu0  ;;  %v791_v34 = vpop.f32.mrf.mxu1 }
 0x126   : > { %1114 = vst.msk [vmem:[%s1717_s23 + $0x20] sm:$0xf] %vm1105_vm4, %v1366_v29  ;;  %v954_v35 = vmax.f32 %v922_v31, 0.0  ;;  %v818_v37 = vadd.f32 %v727_v33, %v317_v23  ;;  %v834_v38 = vadd.f32 %v791_v34, %v333_v28 }
 0x127   : > { %1130 = vst.msk [vmem:[%s1717_s23 + $0x60] sm:$0xf] %vm1105_vm4, %v1382_v30  ;;  %v970_v36 = vmax.f32 %v938_v32, 0.0  ;;  %v884_v40 = vld [vmem:[#allocation2 + $0x50] sm:$0xff]  ;;  %v729_v42 = vpop.f32.mrf.mxu0  ;;  %v793_v43 = vpop.f32.mrf.mxu1 }
 0x128   : > { %v900_v41 = vld [vmem:[#allocation2 + $0xd0] sm:$0xff]  ;;  %v1367_v45 = vpack.c.bf16 %v954_v35, %v954_v35  ;;  %v923_v47 = vadd.f32 %v1707_v2, %v884_v40  ;;  %851 = vst.msk [vmem:[#allocation2 + $0x60] sm:$0xff] %vm272_vm0, %v818_v37  ;;  %867 = vst.msk [vmem:[#allocation2 + $0xe0] sm:$0xff] %vm272_vm0, %v834_v38 }
 0x129   : > { %v1383_v46 = vpack.c.bf16 %v970_v36, %v970_v36  ;;  %v939_v48 = vadd.f32 %v1707_v2, %v900_v41  ;;  %v730_v49 = vpop.f32.mrf.mxu0  ;;  %v794_v50 = vpop.f32.mrf.mxu1 }
 0x12a   : > { %1115 = vst.msk [vmem:[%s1717_s23 + $0x24] sm:$0xf] %vm1105_vm4, %v1367_v45  ;;  %v955_v51 = vmax.f32 %v923_v47, 0.0  ;;  %v819_v53 = vadd.f32 %v730_v49, %v318_v39  ;;  %v835_v54 = vadd.f32 %v794_v50, %v334_v44 }
 0x12b   : > { %1131 = vst.msk [vmem:[%s1717_s23 + $0x64] sm:$0xf] %vm1105_vm4, %v1383_v46  ;;  %v971_v52 = vmax.f32 %v939_v48, 0.0  ;;  %v885_v56 = vld [vmem:[#allocation2 + $0x58] sm:$0xff]  ;;  %v732_v58 = vpop.f32.mrf.mxu0  ;;  %v796_v59 = vpop.f32.mrf.mxu1 }
 0x12c   : > { %v901_v57 = vld [vmem:[#allocation2 + $0xd8] sm:$0xff]  ;;  %v1368_v61 = vpack.c.bf16 %v955_v51, %v955_v51  ;;  %v924_v63 = vadd.f32 %v1707_v2, %v885_v56  ;;  %852 = vst.msk [vmem:[#allocation2 + $0x68] sm:$0xff] %vm272_vm0, %v819_v53  ;;  %868 = vst.msk [vmem:[#allocation2 + $0xe8] sm:$0xff] %vm272_vm0, %v835_v54 }
 0x12d   : > { %v1384_v62 = vpack.c.bf16 %v971_v52, %v971_v52  ;;  %v940_v0 = vadd.f32 %v1707_v2, %v901_v57  ;;  %v735_v1 = vpop.f32.mrf.mxu0  ;;  %v799_v3 = vpop.f32.mrf.mxu1 }
 0x12e   : > { %1116 = vst.msk [vmem:[%s1717_s23 + $0x28] sm:$0xf] %vm1105_vm4, %v1368_v61  ;;  %v956_v4 = vmax.f32 %v924_v63, 0.0  ;;  %v820_v6 = vadd.f32 %v735_v1, %v319_v55  ;;  %v836_v7 = vadd.f32 %v799_v3, %v335_v60 }
 0x12f   : > { %1132 = vst.msk [vmem:[%s1717_s23 + $0x68] sm:$0xf] %vm1105_vm4, %v1384_v62  ;;  %v972_v5 = vmax.f32 %v940_v0, 0.0  ;;  %v886_v9 = vld [vmem:[#allocation2 + $0x60] sm:$0xff]  ;;  %v737_v11 = vpop.f32.mrf.mxu0  ;;  %v801_v12 = vpop.f32.mrf.mxu1 }
 0x130   : > { %v902_v10 = vld [vmem:[#allocation2 + $0xe0] sm:$0xff]  ;;  %v1369_v14 = vpack.c.bf16 %v956_v4, %v956_v4  ;;  %v925_v16 = vadd.f32 %v1707_v2, %v886_v9  ;;  %853 = vst.msk [vmem:[#allocation2 + $0x70] sm:$0xff] %vm272_vm0, %v820_v6  ;;  %869 = vst.msk [vmem:[#allocation2 + $0xf0] sm:$0xff] %vm272_vm0, %v836_v7 }
 0x131   : > { %v1385_v15 = vpack.c.bf16 %v972_v5, %v972_v5  ;;  %v941_v17 = vadd.f32 %v1707_v2, %v902_v10  ;;  %v738_v18 = vpop.f32.mrf.mxu0  ;;  %v802_v19 = vpop.f32.mrf.mxu1 }
 0x132   : > { %1117 = vst.msk [vmem:[%s1717_s23 + $0x2c] sm:$0xf] %vm1105_vm4, %v1369_v14  ;;  %v957_v20 = vmax.f32 %v925_v16, 0.0  ;;  %v821_v22 = vadd.f32 %v738_v18, %v320_v8  ;;  %v837_v23 = vadd.f32 %v802_v19, %v336_v13 }
 0x133   : > { %1133 = vst.msk [vmem:[%s1717_s23 + $0x6c] sm:$0xf] %vm1105_vm4, %v1385_v15  ;;  %v973_v21 = vmax.f32 %v941_v17, 0.0  ;;  %v887_v24 = vld [vmem:[#allocation2 + $0x68] sm:$0xff]  ;;  %v740_v26 = vpop.f32.mrf.mxu0  ;;  %v804_v27 = vpop.f32.mrf.mxu1 }
 0x134   : > { %v903_v25 = vld [vmem:[#allocation2 + $0xe8] sm:$0xff]  ;;  %v1370_v28 = vpack.c.bf16 %v957_v20, %v957_v20  ;;  %v926_v30 = vadd.f32 %v1707_v2, %v887_v24  ;;  %854 = vst.msk [vmem:[#allocation2 + $0x78] sm:$0xff] %vm272_vm0, %v821_v22  ;;  %870 = vst.msk [vmem:[#allocation2 + $0xf8] sm:$0xff] %vm272_vm0, %v837_v23 }
 0x135   : > { %v1386_v29 = vpack.c.bf16 %v973_v21, %v973_v21  ;;  %v942_v31 = vadd.f32 %v1707_v2, %v903_v25 }
 0x136   : > { %1118 = vst.msk [vmem:[%s1717_s23 + $0x30] sm:$0xf] %vm1105_vm4, %v1370_v28  ;;  %v958_v32 = vmax.f32 %v926_v30, 0.0 }
 0x137   : > { %1134 = vst.msk [vmem:[%s1717_s23 + $0x70] sm:$0xf] %vm1105_vm4, %v1386_v29  ;;  %v974_v33 = vmax.f32 %v942_v31, 0.0  ;;  %v888_v34 = vld [vmem:[#allocation2 + $0x70] sm:$0xff] }
 0x138   : > { %v904_v35 = vld [vmem:[#allocation2 + $0xf0] sm:$0xff]  ;;  %v1371_v36 = vpack.c.bf16 %v958_v32, %v958_v32  ;;  %v927_v38 = vadd.f32 %v1707_v2, %v888_v34 }
 0x139   : > { %v1387_v37 = vpack.c.bf16 %v974_v33, %v974_v33  ;;  %v943_v39 = vadd.f32 %v1707_v2, %v904_v35 }
 0x13a   : > { %1119 = vst.msk [vmem:[%s1717_s23 + $0x34] sm:$0xf] %vm1105_vm4, %v1371_v36  ;;  %v959_v40 = vmax.f32 %v927_v38, 0.0 }
 0x13b   : > { %1135 = vst.msk [vmem:[%s1717_s23 + $0x74] sm:$0xf] %vm1105_vm4, %v1387_v37  ;;  %v975_v41 = vmax.f32 %v943_v39, 0.0  ;;  %v889_v42 = vld [vmem:[#allocation2 + $0x78] sm:$0xff] }
 0x13c   : > { %v905_v43 = vld [vmem:[#allocation2 + $0xf8] sm:$0xff]  ;;  %v1372_v44 = vpack.c.bf16 %v959_v40, %v959_v40  ;;  %v928_v46 = vadd.f32 %v1707_v2, %v889_v42 }
 0x13d   : > { %v1388_v45 = vpack.c.bf16 %v975_v41, %v975_v41  ;;  %v944_v47 = vadd.f32 %v1707_v2, %v905_v43 }
 0x13e   : > { %1120 = vst.msk [vmem:[%s1717_s23 + $0x38] sm:$0xf] %vm1105_vm4, %v1372_v44  ;;  %v960_v48 = vmax.f32 %v928_v46, 0.0 }
 0x13f   : > { %1136 = vst.msk [vmem:[%s1717_s23 + $0x78] sm:$0xf] %vm1105_vm4, %v1388_v45  ;;  %v976_v49 = vmax.f32 %v944_v47, 0.0 }
 0x140   : > { %v1373_v50 = vpack.c.bf16 %v960_v48, %v960_v48 }
 0x141   : > { %v1389_v51 = vpack.c.bf16 %v976_v49, %v976_v49 }
 0x142   : > { %1121 = vst.msk [vmem:[%s1717_s23 + $0x3c] sm:$0xf] %vm1105_vm4, %v1373_v50 }
 0x143   : > { %1137 = vst.msk [vmem:[%s1717_s23 + $0x7c] sm:$0xf] %vm1105_vm4, %v1389_v51 }
 0x144 PF: > { %s13_s14 = sadd.s32 1, %s1517_s14   ;;  %s1852_s12 = smov %s1513_s13 }
 0x145   : > { %p10_p5 = scmp.ge.s32.totalorder %s13_s14, 4   ;;  %s1853_s13 = smov %s1855_s15 }
 0x147   :  { %12 = sbr.rel (!%p10_p5) target bundleno = 2 (0x2), region = 76 }

</bundles_post_ra>
